<compile_context>
chip_gen: v7x
topology: tpu7x:2x2x1
jax: 0.10.0
libtpu: 0.0.40
codegen_flags: <defaults>
</compile_context>

<pallas_src>
import functools
import math

import jax
import jax.numpy as jnp
from jax.experimental import pallas as pl
from jax.experimental.pallas import tpu as pltpu

HEAD_NUM = 2
LN_EPS = 1e-5
WEIGHT_DTYPE = jnp.bfloat16   # MXU-operand / weight-storage dtype


# ----------------------------- small helpers --------------------------------

def _round_up(x, m):
    return ((x + m - 1) // m) * m


def _pick_chunk(total, target, align):
    """Largest multiple of `align` that divides `total` and is <= `target`.
    Falls back to `total` (one full-size chunk) if no aligned divisor exists."""
    if total <= target:
        return total
    c = (target // align) * align
    while c >= align:
        if total % c == 0:
            return c
        c -= align
    return total


def _vmem_capacity_bytes():
    try:
        return int(pltpu.get_tpu_info().vmem_capacity_bytes)
    except Exception:
        return 64 << 20    # conservative default (v7x per-TensorCore VMEM)


def _nbytes(shape, dtype):
    return math.prod(shape) * jnp.dtype(dtype).itemsize


def _layernorm(x, gamma, beta):
    mean = jnp.mean(x, axis=-1, keepdims=True)
    var = jnp.mean((x - mean) ** 2, axis=-1, keepdims=True)
    return (x - mean) * jax.lax.rsqrt(var + LN_EPS) * gamma + beta


def _gelu_exact(x):
    return 0.5 * x * (1.0 + jax.lax.erf(x * (1.0 / math.sqrt(2.0))))


# ----------------------------- kernel 1: MHA + LN1 ---------------------------

def attention_ln_kernel(x_ref, wq_ref, wk_ref, wv_ref, wc_ref,
                        bq_ref, bk_ref, bv_ref, gamma_ref, beta_ref,
                        o_ref, *, head_num, key_chunk):
    x = x_ref[...]                                    # (S, H) f32
    S, H = x.shape
    hd = H // head_num
    n_kc = S // key_chunk
    xw = x.astype(WEIGHT_DTYPE)

    attn = jnp.zeros((S, H), jnp.float32)
    for h in range(head_num):                         # static 2-iteration loop
        cs = slice(h * hd, (h + 1) * hd)
        # Wq / bq already carry the 1/sqrt(head_dim) scale (folded in wrapper).
        q = (jnp.dot(xw, wq_ref[:, cs], preferred_element_type=jnp.float32)
             + bq_ref[0, cs])
        qw = q.astype(WEIGHT_DTYPE)

        acc = jnp.zeros((S, hd), jnp.float32)
        for c in range(n_kc):                         # key-axis chunking
            rs = slice(c * key_chunk, (c + 1) * key_chunk)
            xk = xw[rs, :]                            # (tk, H)
            k = (jnp.dot(xk, wk_ref[:, cs], preferred_element_type=jnp.float32)
                 + bk_ref[0, cs])
            v = (jnp.dot(xk, wv_ref[:, cs], preferred_element_type=jnp.float32)
                 + bv_ref[0, cs])
            s = jnp.dot(qw, k.astype(WEIGHT_DTYPE).T,
                        preferred_element_type=jnp.float32)       # (S, tk)
            # Reference softmax is over the QUERY axis, so every key column
            # normalizes independently -> single-pass key chunking is exact.
            w = jax.nn.softmax(s, axis=0)
            acc = acc + jnp.dot(w.astype(WEIGHT_DTYPE), v.astype(WEIGHT_DTYPE),
                                preferred_element_type=jnp.float32)
        # concat(heads) @ Wc == sum_h head_out @ Wc[h*hd:(h+1)*hd, :]
        attn = attn + jnp.dot(acc.astype(WEIGHT_DTYPE), wc_ref[cs, :],
                              preferred_element_type=jnp.float32)

    o_ref[...] = _layernorm(x + attn, gamma_ref[0], beta_ref[0])


# ----------------------------- kernel 2: FFN + LN2 ---------------------------

def ffn_ln_kernel(x1_ref, w1_ref, b1_ref, w2_ref, b2_ref,
                  gamma_ref, beta_ref, o_ref, acc_ref):
    c = pl.program_id(1)

    @pl.when(c == 0)
    def _init():
        acc_ref[...] = jnp.zeros_like(acc_ref)

    x1 = x1_ref[...]                                  # (rb, H) f32
    h1 = _gelu_exact(
        jnp.dot(x1.astype(WEIGHT_DTYPE), w1_ref[...],
                preferred_element_type=jnp.float32) + b1_ref[0])
    acc_ref[...] += jnp.dot(h1.astype(WEIGHT_DTYPE), w2_ref[...],
                            preferred_element_type=jnp.float32)

    @pl.when(c == pl.num_programs(1) - 1)
    def _finalize():
        h2 = acc_ref[...] + b2_ref[0]
        o_ref[...] = _layernorm(x1 + h2, gamma_ref[0], beta_ref[0])


# ----------------------------- wrapper ---------------------------------------

def transformer_layer(x, params, *, row_block=None, ff_chunk=None,
                      key_chunk=None):
    B, S, H = x.shape
    assert H % HEAD_NUM == 0
    hd = H // HEAD_NUM
    H4 = 4 * H
    x = x.astype(jnp.float32)

    vmem_cap = _vmem_capacity_bytes()
    vmem_ceiling = vmem_cap - (2 << 20)               # ~2 MiB headroom

    # ---- wrapper-side weight prep (free): fold softmax scale into q --------
    scale = 1.0 / math.sqrt(hd)
    wq = (params["wq"] * scale).astype(WEIGHT_DTYPE)
    bq = (params["bq"] * scale).astype(jnp.float32)
    wk = params["wk"].astype(WEIGHT_DTYPE)
    bk = params["bk"].astype(jnp.float32)
    wv = params["wv"].astype(WEIGHT_DTYPE)
    bv = params["bv"].astype(jnp.float32)
    wc = params["wc"].astype(WEIGHT_DTYPE)
    w1 = params["w1"].astype(WEIGHT_DTYPE)
    w2 = params["w2"].astype(WEIGHT_DTYPE)
    b1 = params["b1"].astype(jnp.float32)
    b2 = params["b2"].astype(jnp.float32)
    gamma = params["gamma"].astype(jnp.float32)
    beta = params["beta"].astype(jnp.float32)

    # ------------------------- stage 1: attention + LN1 ---------------------
    if key_chunk is None:
        key_chunk = _pick_chunk(S, 512, 128) if S > 512 else S
    assert S % key_chunk == 0

    def const2(shape):
        return pl.BlockSpec(shape, lambda b: (0, 0))

    attn_in_specs = [
        pl.BlockSpec((None, S, H), lambda b: (b, 0, 0)),           # x
        const2((H, H)), const2((H, H)), const2((H, H)), const2((H, H)),
        const2((1, H)), const2((1, H)), const2((1, H)),
        const2((1, H)), const2((1, H)),
    ]
    attn_out_spec = pl.BlockSpec((None, S, H), lambda b: (b, 0, 0))

    attn_est = (
        2 * 2 * _nbytes((S, H), jnp.float32)            # x in + x1 out (dbl buf)
        + 2 * 4 * _nbytes((H, H), WEIGHT_DTYPE)         # wq, wk, wv, wc (dbl buf)
        + 2 * 5 * _nbytes((1, H), jnp.float32)          # biases / gamma / beta
        + 3 * _nbytes((S, H), jnp.float32)              # xw / attn intermediates
        + 2 * _nbytes((S, key_chunk), jnp.float32)      # scores + weights
        + 4 * _nbytes((S, hd), jnp.float32)
        + 2 * _nbytes((key_chunk, hd), jnp.float32))
    attn_vmem = min(max(attn_est + (16 << 20), 32 << 20), vmem_ceiling)

    x1 = pl.pallas_call(
        functools.partial(attention_ln_kernel, head_num=HEAD_NUM,
                          key_chunk=key_chunk),
        out_shape=jax.ShapeDtypeStruct((B, S, H), jnp.float32),
        grid_spec=pltpu.PrefetchScalarGridSpec(
            num_scalar_prefetch=0,
            grid=(B,),
            in_specs=attn_in_specs,
            out_specs=attn_out_spec,
        ),
        compiler_params=pltpu.CompilerParams(
            dimension_semantics=("parallel",),
            vmem_limit_bytes=attn_vmem),
    )(x, wq, wk, wv, wc, bq, bk, bv, gamma, beta)

    # ------------------------- stage 2: FFN + LN2 ---------------------------
    rows = B * S
    if row_block is None:
        row_block = min(256, _round_up(rows, 8))        # fill the MXU M dim
    rows_p = _round_up(rows, row_block)
    x1f = x1.reshape(rows, H)
    if rows_p != rows:
        # Zero rows are harmless (LayerNorm(0)+eps is finite) and discarded.
        x1f = jnp.pad(x1f, ((0, rows_p - rows), (0, 0)))
    nr = rows_p // row_block

    if ff_chunk is None:
        target = 2048 if vmem_cap >= (100 << 20) else 512   # v5e/v6e vs v7x
        ff_chunk = _pick_chunk(H4, target, 128)
    assert H4 % ff_chunk == 0
    nc = H4 // ff_chunk

    ffn_in_specs = [
        pl.BlockSpec((row_block, H), lambda i, c: (i, 0)),   # x1 row block
        pl.BlockSpec((H, ff_chunk), lambda i, c: (0, c)),    # W1 chunk
        pl.BlockSpec((1, ff_chunk), lambda i, c: (0, c)),    # b1 chunk
        pl.BlockSpec((ff_chunk, H), lambda i, c: (c, 0)),    # W2 chunk
        pl.BlockSpec((1, H), lambda i, c: (0, 0)),           # b2
        pl.BlockSpec((1, H), lambda i, c: (0, 0)),           # gamma
        pl.BlockSpec((1, H), lambda i, c: (0, 0)),           # beta
    ]
    ffn_out_spec = pl.BlockSpec((row_block, H), lambda i, c: (i, 0))

    ffn_est = (
        2 * 2 * _nbytes((row_block, H), jnp.float32)         # x1 in + out (dbl)
        + 2 * _nbytes((H, ff_chunk), WEIGHT_DTYPE)
        + 2 * _nbytes((ff_chunk, H), WEIGHT_DTYPE)
        + 2 * _nbytes((1, ff_chunk), jnp.float32)
        + 2 * 3 * _nbytes((1, H), jnp.float32)
        + _nbytes((row_block, H), jnp.float32)               # accumulator
        + 2 * _nbytes((row_block, ff_chunk), jnp.float32))   # h1 intermediate
    ffn_vmem = min(max(ffn_est + (16 << 20), 32 << 20), vmem_ceiling)

    out_f = pl.pallas_call(
        ffn_ln_kernel,
        out_shape=jax.ShapeDtypeStruct((rows_p, H), jnp.float32),
        grid_spec=pltpu.PrefetchScalarGridSpec(
            num_scalar_prefetch=0,
            grid=(nr, nc),
            in_specs=ffn_in_specs,
            out_specs=ffn_out_spec,
            scratch_shapes=[pltpu.VMEM((row_block, H), jnp.float32)],
        ),
        compiler_params=pltpu.CompilerParams(
            dimension_semantics=("parallel", "arbitrary"),
            vmem_limit_bytes=ffn_vmem),
    )(x1f, w1, b1, w2, b2, gamma, beta)

    return out_f[:rows].reshape(B, S, H)


# ----------------------------- references -----------------------------------

def reference_transformer_layer(x, params):
    """Pure-f32 JAX reference mirroring the PyTorch module (mask=None)."""
    hd = x.shape[-1] // HEAD_NUM
    scale = 1.0 / math.sqrt(hd)

    q = x @ params["wq"] + params["bq"][0]
    k = x @ params["wk"] + params["bk"][0]
    v = x @ params["wv"] + params["bv"][0]

    def split(t):  # (B,S,H) -> (head,B,S,hd)
        return jnp.stack(jnp.split(t, HEAD_NUM, axis=-1), axis=0)

    qs, ks, vs = split(q), split(k), split(v)
    scores = jnp.einsum("hbqd,hbkd->hbqk", qs, ks) * scale
    w = jax.nn.softmax(scores, axis=2)            # dim=2 as in the reference
    out = jnp.einsum("hbqk,hbkd->hbqd", w, vs)
    attn = jnp.concatenate([out[i] for i in range(HEAD_NUM)], axis=-1)
    attn = attn @ params["wc"]

    gamma, beta = params["gamma"][0], params["beta"][0]
    x1 = _layernorm(x + attn, gamma, beta)
    h1 = _gelu_exact(x1 @ params["w1"] + params["b1"][0])
    h2 = h1 @ params["w2"] + params["b2"][0]
    return _layernorm(x1 + h2, gamma, beta)


def reference_transformer_layer_bf16(x, params):
    """Reference applying the same bf16 matmul-operand casts as the kernel."""
    B, S, H = x.shape
    hd = H // HEAD_NUM
    scale = 1.0 / math.sqrt(hd)
    wdt, f32 = WEIGHT_DTYPE, jnp.float32

    wq = (params["wq"] * scale).astype(wdt)
    bq = (params["bq"][0] * scale).astype(f32)
    wk = params["wk"].astype(wdt); bk = params["bk"][0]
    wv = params["wv"].astype(wdt); bv = params["bv"][0]
    wc = params["wc"].astype(wdt)
    gamma, beta = params["gamma"][0], params["beta"][0]

    xw = x.astype(wdt)
    attn = jnp.zeros((B, S, H), f32)
    for h in range(HEAD_NUM):
        cs = slice(h * hd, (h + 1) * hd)
        q = jnp.einsum("bsh,hd->bsd", xw, wq[:, cs],
                       preferred_element_type=f32) + bq[cs]
        k = jnp.einsum("bsh,hd->bsd", xw, wk[:, cs],
                       preferred_element_type=f32) + bk[cs]
        v = jnp.einsum("bsh,hd->bsd", xw, wv[:, cs],
                       preferred_element_type=f32) + bv[cs]
        s = jnp.einsum("bqd,bkd->bqk", q.astype(wdt), k.astype(wdt),
                       preferred_element_type=f32)
        w = jax.nn.softmax(s, axis=1)             # query axis
        o = jnp.einsum("bqk,bkd->bqd", w.astype(wdt), v.astype(wdt),
                       preferred_element_type=f32)
        attn = attn + jnp.einsum("bqd,dh->bqh", o.astype(wdt), wc[cs, :],
                                 preferred_element_type=f32)
    x1 = _layernorm(x + attn, gamma, beta)

    h1 = _gelu_exact(jnp.einsum("bsh,hf->bsf", x1.astype(wdt),
                                params["w1"].astype(wdt),
                                preferred_element_type=f32) + params["b1"][0])
    h2 = jnp.einsum("bsf,fh->bsh", h1.astype(wdt), params["w2"].astype(wdt),
                    preferred_element_type=f32) + params["b2"][0]
    return _layernorm(x1 + h2, gamma, beta)


def init_params(key, H, init_range=0.02):
    H4 = 4 * H
    ks = jax.random.split(key, 12)
    n = lambda k, shape, s=init_range: (s * jax.random.normal(k, shape)).astype(jnp.float32)
    return {
        # Linear weights stored as (in, out), i.e. already transposed.
        "wq": n(ks[0], (H, H)),  "bq": n(ks[1], (1, H)),
        "wk": n(ks[2], (H, H)),  "bk": n(ks[3], (1, H)),
        "wv": n(ks[4], (H, H)),  "bv": n(ks[5], (1, H)),
        "wc": n(ks[6], (H, H)),
        "w1": n(ks[7], (H, H4)), "b1": n(ks[8], (1, H4)),
        "w2": n(ks[9], (H4, H)), "b2": n(ks[10], (1, H)),
        "gamma": jnp.ones((1, H), jnp.float32),
        "beta": jnp.zeros((1, H), jnp.float32),
    }


if __name__ == "__main__":
    B, S, H = 2, 8, 32
    key = jax.random.PRNGKey(0)
    kx, kp = jax.random.split(key)
    x = jax.random.normal(kx, (B, S, H), dtype=jnp.float32)
    params = init_params(kp, H)

    out = jax.block_until_ready(transformer_layer(x, params))
    assert out.shape == (B, S, H)

    ref_matched = reference_transformer_layer_bf16(x, params)  # same casts
    ref_f32 = reference_transformer_layer(x, params)           # module semantics
    err_m = float(jnp.max(jnp.abs(out - ref_matched)))
    err_f = float(jnp.max(jnp.abs(out - ref_f32)))
    assert jnp.allclose(out, ref_matched, rtol=5e-3, atol=5e-3), \
        f"matched-ref max abs err {err_m}"
    assert jnp.allclose(out, ref_f32, rtol=3e-2, atol=3e-2), \
        f"f32-ref max abs err {err_f}"

    print("KERNEL_OK")
</pallas_src>

<mosaic_0001>
module attributes {stable_mosaic.version = 11 : i64} {
  func.func @attention_ln_kernel(%arg0: i32, %arg1: memref<1x8x32xf32, #tpu.memory_space<vmem>>, %arg2: memref<32x32xbf16, #tpu.memory_space<vmem>>, %arg3: memref<32x32xbf16, #tpu.memory_space<vmem>>, %arg4: memref<32x32xbf16, #tpu.memory_space<vmem>>, %arg5: memref<32x32xbf16, #tpu.memory_space<vmem>>, %arg6: memref<1x32xf32, #tpu.memory_space<vmem>>, %arg7: memref<1x32xf32, #tpu.memory_space<vmem>>, %arg8: memref<1x32xf32, #tpu.memory_space<vmem>>, %arg9: memref<1x32xf32, #tpu.memory_space<vmem>>, %arg10: memref<1x32xf32, #tpu.memory_space<vmem>>, %arg11: memref<1x8x32xf32, #tpu.memory_space<vmem>>) attributes {dimension_semantics = [#tpu.dimension_semantics<parallel>], iteration_bounds = array<i64: 2>, scalar_prefetch = 0 : i64, scratch_operands = 0 : i64, tpu.core_type = #tpu.core_type<tc>, window_params = [{transform_indices = @transform_0, window_bounds = array<i64: 1, 8, 32>}, {pipeline_mode = #tpu.pipeline_mode<synchronous>, transform_indices = @transform_1, window_bounds = array<i64: 32, 32>}, {pipeline_mode = #tpu.pipeline_mode<synchronous>, transform_indices = @transform_2, window_bounds = array<i64: 32, 32>}, {pipeline_mode = #tpu.pipeline_mode<synchronous>, transform_indices = @transform_3, window_bounds = array<i64: 32, 32>}, {pipeline_mode = #tpu.pipeline_mode<synchronous>, transform_indices = @transform_4, window_bounds = array<i64: 32, 32>}, {pipeline_mode = #tpu.pipeline_mode<synchronous>, transform_indices = @transform_5, window_bounds = array<i64: 1, 32>}, {pipeline_mode = #tpu.pipeline_mode<synchronous>, transform_indices = @transform_6, window_bounds = array<i64: 1, 32>}, {pipeline_mode = #tpu.pipeline_mode<synchronous>, transform_indices = @transform_7, window_bounds = array<i64: 1, 32>}, {pipeline_mode = #tpu.pipeline_mode<synchronous>, transform_indices = @transform_8, window_bounds = array<i64: 1, 32>}, {pipeline_mode = #tpu.pipeline_mode<synchronous>, transform_indices = @transform_9, window_bounds = array<i64: 1, 32>}, {transform_indices = @transform_10, window_bounds = array<i64: 1, 8, 32>}]} {
    %c0 = arith.constant 0 : index
    %c0_0 = arith.constant 0 : index
    %c0_1 = arith.constant 0 : index
    %0 = vector.load %arg1[%c0, %c0_0, %c0_1] : memref<1x8x32xf32, #tpu.memory_space<vmem>>, vector<1x8x32xf32>
    %1 = vector.shape_cast %0 : vector<1x8x32xf32> to vector<8x32xf32>
    %2 = arith.truncf %1 : vector<8x32xf32> to vector<8x32xbf16>
    %cst = arith.constant 0.000000e+00 : f32
    %3 = vector.broadcast %cst : f32 to vector<8x32xf32>
    %c0_2 = arith.constant 0 : index
    %c0_3 = arith.constant 0 : index
    %4 = vector.load %arg2[%c0_2, %c0_3] : memref<32x32xbf16, #tpu.memory_space<vmem>>, vector<32x16xbf16>
    %cst_4 = arith.constant dense<0.000000e+00> : vector<8x16xf32>
    %5 = tpu.matmul %2, %4, %cst_4 {dimension_numbers = #tpu.dot_dimension_numbers<[1], [0], [0], [1], [0, 0, 1, 1], [], []>} : vector<8x32xbf16>, vector<32x16xbf16>, vector<8x16xf32> -> vector<8x16xf32>
    %c0_5 = arith.constant 0 : index
    %c0_6 = arith.constant 0 : index
    %6 = vector.load %arg6[%c0_5, %c0_6] : memref<1x32xf32, #tpu.memory_space<vmem>>, vector<1x16xf32>
    %7 = vector.shape_cast %6 : vector<1x16xf32> to vector<16xf32>
    %8 = vector.shape_cast %7 : vector<16xf32> to vector<1x16xf32>
    %9 = vector.broadcast %8 : vector<1x16xf32> to vector<8x16xf32>
    %10 = arith.addf %5, %9 : vector<8x16xf32>
    %11 = arith.truncf %10 : vector<8x16xf32> to vector<8x16xbf16>
    %cst_7 = arith.constant 0.000000e+00 : f32
    %12 = vector.broadcast %cst_7 : f32 to vector<8x16xf32>
    %c0_8 = arith.constant 0 : index
    %c0_9 = arith.constant 0 : index
    %13 = vector.load %arg3[%c0_8, %c0_9] : memref<32x32xbf16, #tpu.memory_space<vmem>>, vector<32x16xbf16>
    %cst_10 = arith.constant dense<0.000000e+00> : vector<8x16xf32>
    %14 = tpu.matmul %2, %13, %cst_10 {dimension_numbers = #tpu.dot_dimension_numbers<[1], [0], [0], [1], [0, 0, 1, 1], [], []>} : vector<8x32xbf16>, vector<32x16xbf16>, vector<8x16xf32> -> vector<8x16xf32>
    %c0_11 = arith.constant 0 : index
    %c0_12 = arith.constant 0 : index
    %15 = vector.load %arg7[%c0_11, %c0_12] : memref<1x32xf32, #tpu.memory_space<vmem>>, vector<1x16xf32>
    %16 = vector.shape_cast %15 : vector<1x16xf32> to vector<16xf32>
    %17 = vector.shape_cast %16 : vector<16xf32> to vector<1x16xf32>
    %18 = vector.broadcast %17 : vector<1x16xf32> to vector<8x16xf32>
    %19 = arith.addf %14, %18 : vector<8x16xf32>
    %c0_13 = arith.constant 0 : index
    %c0_14 = arith.constant 0 : index
    %20 = vector.load %arg4[%c0_13, %c0_14] : memref<32x32xbf16, #tpu.memory_space<vmem>>, vector<32x16xbf16>
    %cst_15 = arith.constant dense<0.000000e+00> : vector<8x16xf32>
    %21 = tpu.matmul %2, %20, %cst_15 {dimension_numbers = #tpu.dot_dimension_numbers<[1], [0], [0], [1], [0, 0, 1, 1], [], []>} : vector<8x32xbf16>, vector<32x16xbf16>, vector<8x16xf32> -> vector<8x16xf32>
    %c0_16 = arith.constant 0 : index
    %c0_17 = arith.constant 0 : index
    %22 = vector.load %arg8[%c0_16, %c0_17] : memref<1x32xf32, #tpu.memory_space<vmem>>, vector<1x16xf32>
    %23 = vector.shape_cast %22 : vector<1x16xf32> to vector<16xf32>
    %24 = vector.shape_cast %23 : vector<16xf32> to vector<1x16xf32>
    %25 = vector.broadcast %24 : vector<1x16xf32> to vector<8x16xf32>
    %26 = arith.addf %21, %25 : vector<8x16xf32>
    %27 = arith.truncf %19 : vector<8x16xf32> to vector<8x16xbf16>
    %28 = tpu.transpose %27, [1, 0] : vector<8x16xbf16> -> vector<16x8xbf16>
    %cst_18 = arith.constant dense<0.000000e+00> : vector<8x8xf32>
    %29 = tpu.matmul %11, %28, %cst_18 {dimension_numbers = #tpu.dot_dimension_numbers<[1], [0], [0], [1], [0, 0, 1, 1], [], []>} : vector<8x16xbf16>, vector<16x8xbf16>, vector<8x8xf32> -> vector<8x8xf32>
    %cst_19 = arith.constant dense<0xFF800000> : vector<8xf32>
    %30 = vector.multi_reduction <maximumf>, %29, %cst_19 [0] : vector<8x8xf32> to vector<8xf32>
    %cst_20 = arith.constant 0xFF800000 : f32
    %31 = vector.broadcast %cst_20 : f32 to vector<8xf32>
    %32 = arith.maximumf %31, %30 : vector<8xf32>
    %33 = vector.shape_cast %32 : vector<8xf32> to vector<1x8xf32>
    %34 = vector.broadcast %33 : vector<1x8xf32> to vector<8x8xf32>
    %35 = arith.subf %29, %34 : vector<8x8xf32>
    %36 = math.exp %35 : vector<8x8xf32>
    %cst_21 = arith.constant dense<0.000000e+00> : vector<8xf32>
    %37 = vector.multi_reduction <add>, %36, %cst_21 [0] : vector<8x8xf32> to vector<8xf32>
    %38 = vector.shape_cast %37 : vector<8xf32> to vector<1x8xf32>
    %39 = vector.broadcast %38 : vector<1x8xf32> to vector<8x8xf32>
    %40 = arith.divf %36, %39 : vector<8x8xf32>
    %41 = arith.truncf %40 : vector<8x8xf32> to vector<8x8xbf16>
    %42 = arith.truncf %26 : vector<8x16xf32> to vector<8x16xbf16>
    %cst_22 = arith.constant dense<0.000000e+00> : vector<8x16xf32>
    %43 = tpu.matmul %41, %42, %cst_22 {dimension_numbers = #tpu.dot_dimension_numbers<[1], [0], [0], [1], [0, 0, 1, 1], [], []>} : vector<8x8xbf16>, vector<8x16xbf16>, vector<8x16xf32> -> vector<8x16xf32>
    %44 = arith.addf %12, %43 : vector<8x16xf32>
    %45 = arith.truncf %44 : vector<8x16xf32> to vector<8x16xbf16>
    %c0_23 = arith.constant 0 : index
    %c0_24 = arith.constant 0 : index
    %46 = vector.load %arg5[%c0_23, %c0_24] : memref<32x32xbf16, #tpu.memory_space<vmem>>, vector<16x32xbf16>
    %cst_25 = arith.constant dense<0.000000e+00> : vector<8x32xf32>
    %47 = tpu.matmul %45, %46, %cst_25 {dimension_numbers = #tpu.dot_dimension_numbers<[1], [0], [0], [1], [0, 0, 1, 1], [], []>} : vector<8x16xbf16>, vector<16x32xbf16>, vector<8x32xf32> -> vector<8x32xf32>
    %48 = arith.addf %3, %47 : vector<8x32xf32>
    %c0_26 = arith.constant 0 : index
    %c16 = arith.constant 16 : index
    %49 = vector.load %arg2[%c0_26, %c16] : memref<32x32xbf16, #tpu.memory_space<vmem>>, vector<32x16xbf16>
    %cst_27 = arith.constant dense<0.000000e+00> : vector<8x16xf32>
    %50 = tpu.matmul %2, %49, %cst_27 {dimension_numbers = #tpu.dot_dimension_numbers<[1], [0], [0], [1], [0, 0, 1, 1], [], []>} : vector<8x32xbf16>, vector<32x16xbf16>, vector<8x16xf32> -> vector<8x16xf32>
    %c0_28 = arith.constant 0 : index
    %c16_29 = arith.constant 16 : index
    %51 = vector.load %arg6[%c0_28, %c16_29] : memref<1x32xf32, #tpu.memory_space<vmem>>, vector<1x16xf32>
    %52 = vector.shape_cast %51 : vector<1x16xf32> to vector<16xf32>
    %53 = vector.shape_cast %52 : vector<16xf32> to vector<1x16xf32>
    %54 = vector.broadcast %53 : vector<1x16xf32> to vector<8x16xf32>
    %55 = arith.addf %50, %54 : vector<8x16xf32>
    %56 = arith.truncf %55 : vector<8x16xf32> to vector<8x16xbf16>
    %cst_30 = arith.constant 0.000000e+00 : f32
    %57 = vector.broadcast %cst_30 : f32 to vector<8x16xf32>
    %c0_31 = arith.constant 0 : index
    %c16_32 = arith.constant 16 : index
    %58 = vector.load %arg3[%c0_31, %c16_32] : memref<32x32xbf16, #tpu.memory_space<vmem>>, vector<32x16xbf16>
    %cst_33 = arith.constant dense<0.000000e+00> : vector<8x16xf32>
    %59 = tpu.matmul %2, %58, %cst_33 {dimension_numbers = #tpu.dot_dimension_numbers<[1], [0], [0], [1], [0, 0, 1, 1], [], []>} : vector<8x32xbf16>, vector<32x16xbf16>, vector<8x16xf32> -> vector<8x16xf32>
    %c0_34 = arith.constant 0 : index
    %c16_35 = arith.constant 16 : index
    %60 = vector.load %arg7[%c0_34, %c16_35] : memref<1x32xf32, #tpu.memory_space<vmem>>, vector<1x16xf32>
    %61 = vector.shape_cast %60 : vector<1x16xf32> to vector<16xf32>
    %62 = vector.shape_cast %61 : vector<16xf32> to vector<1x16xf32>
    %63 = vector.broadcast %62 : vector<1x16xf32> to vector<8x16xf32>
    %64 = arith.addf %59, %63 : vector<8x16xf32>
    %c0_36 = arith.constant 0 : index
    %c16_37 = arith.constant 16 : index
    %65 = vector.load %arg4[%c0_36, %c16_37] : memref<32x32xbf16, #tpu.memory_space<vmem>>, vector<32x16xbf16>
    %cst_38 = arith.constant dense<0.000000e+00> : vector<8x16xf32>
    %66 = tpu.matmul %2, %65, %cst_38 {dimension_numbers = #tpu.dot_dimension_numbers<[1], [0], [0], [1], [0, 0, 1, 1], [], []>} : vector<8x32xbf16>, vector<32x16xbf16>, vector<8x16xf32> -> vector<8x16xf32>
    %c0_39 = arith.constant 0 : index
    %c16_40 = arith.constant 16 : index
    %67 = vector.load %arg8[%c0_39, %c16_40] : memref<1x32xf32, #tpu.memory_space<vmem>>, vector<1x16xf32>
    %68 = vector.shape_cast %67 : vector<1x16xf32> to vector<16xf32>
    %69 = vector.shape_cast %68 : vector<16xf32> to vector<1x16xf32>
    %70 = vector.broadcast %69 : vector<1x16xf32> to vector<8x16xf32>
    %71 = arith.addf %66, %70 : vector<8x16xf32>
    %72 = arith.truncf %64 : vector<8x16xf32> to vector<8x16xbf16>
    %73 = tpu.transpose %72, [1, 0] : vector<8x16xbf16> -> vector<16x8xbf16>
    %cst_41 = arith.constant dense<0.000000e+00> : vector<8x8xf32>
    %74 = tpu.matmul %56, %73, %cst_41 {dimension_numbers = #tpu.dot_dimension_numbers<[1], [0], [0], [1], [0, 0, 1, 1], [], []>} : vector<8x16xbf16>, vector<16x8xbf16>, vector<8x8xf32> -> vector<8x8xf32>
    %cst_42 = arith.constant dense<0xFF800000> : vector<8xf32>
    %75 = vector.multi_reduction <maximumf>, %74, %cst_42 [0] : vector<8x8xf32> to vector<8xf32>
    %cst_43 = arith.constant 0xFF800000 : f32
    %76 = vector.broadcast %cst_43 : f32 to vector<8xf32>
    %77 = arith.maximumf %76, %75 : vector<8xf32>
    %78 = vector.shape_cast %77 : vector<8xf32> to vector<1x8xf32>
    %79 = vector.broadcast %78 : vector<1x8xf32> to vector<8x8xf32>
    %80 = arith.subf %74, %79 : vector<8x8xf32>
    %81 = math.exp %80 : vector<8x8xf32>
    %cst_44 = arith.constant dense<0.000000e+00> : vector<8xf32>
    %82 = vector.multi_reduction <add>, %81, %cst_44 [0] : vector<8x8xf32> to vector<8xf32>
    %83 = vector.shape_cast %82 : vector<8xf32> to vector<1x8xf32>
    %84 = vector.broadcast %83 : vector<1x8xf32> to vector<8x8xf32>
    %85 = arith.divf %81, %84 : vector<8x8xf32>
    %86 = arith.truncf %85 : vector<8x8xf32> to vector<8x8xbf16>
    %87 = arith.truncf %71 : vector<8x16xf32> to vector<8x16xbf16>
    %cst_45 = arith.constant dense<0.000000e+00> : vector<8x16xf32>
    %88 = tpu.matmul %86, %87, %cst_45 {dimension_numbers = #tpu.dot_dimension_numbers<[1], [0], [0], [1], [0, 0, 1, 1], [], []>} : vector<8x8xbf16>, vector<8x16xbf16>, vector<8x16xf32> -> vector<8x16xf32>
    %89 = arith.addf %57, %88 : vector<8x16xf32>
    %90 = arith.truncf %89 : vector<8x16xf32> to vector<8x16xbf16>
    %c16_46 = arith.constant 16 : index
    %c0_47 = arith.constant 0 : index
    %91 = vector.load %arg5[%c16_46, %c0_47] : memref<32x32xbf16, #tpu.memory_space<vmem>>, vector<16x32xbf16>
    %cst_48 = arith.constant dense<0.000000e+00> : vector<8x32xf32>
    %92 = tpu.matmul %90, %91, %cst_48 {dimension_numbers = #tpu.dot_dimension_numbers<[1], [0], [0], [1], [0, 0, 1, 1], [], []>} : vector<8x16xbf16>, vector<16x32xbf16>, vector<8x32xf32> -> vector<8x32xf32>
    %93 = arith.addf %48, %92 : vector<8x32xf32>
    %94 = arith.addf %1, %93 : vector<8x32xf32>
    %c0_49 = arith.constant 0 : index
    %c0_50 = arith.constant 0 : index
    %95 = vector.load %arg9[%c0_49, %c0_50] : memref<1x32xf32, #tpu.memory_space<vmem>>, vector<1x32xf32>
    %96 = vector.shape_cast %95 : vector<1x32xf32> to vector<32xf32>
    %c0_51 = arith.constant 0 : index
    %c0_52 = arith.constant 0 : index
    %97 = vector.load %arg10[%c0_51, %c0_52] : memref<1x32xf32, #tpu.memory_space<vmem>>, vector<1x32xf32>
    %98 = vector.shape_cast %97 : vector<1x32xf32> to vector<32xf32>
    %cst_53 = arith.constant dense<0.000000e+00> : vector<8xf32>
    %99 = vector.multi_reduction <add>, %94, %cst_53 [1] : vector<8x32xf32> to vector<8xf32>
    %100 = vector.shape_cast %99 : vector<8xf32> to vector<8x1xf32>
    %cst_54 = arith.constant 3.200000e+01 : f32
    %101 = vector.broadcast %cst_54 : f32 to vector<8x1xf32>
    %102 = arith.divf %100, %101 : vector<8x1xf32>
    %103 = vector.broadcast %102 : vector<8x1xf32> to vector<8x32xf32>
    %104 = arith.subf %94, %103 : vector<8x32xf32>
    %105 = arith.mulf %104, %104 : vector<8x32xf32>
    %cst_55 = arith.constant dense<0.000000e+00> : vector<8xf32>
    %106 = vector.multi_reduction <add>, %105, %cst_55 [1] : vector<8x32xf32> to vector<8xf32>
    %107 = vector.shape_cast %106 : vector<8xf32> to vector<8x1xf32>
    %cst_56 = arith.constant 3.200000e+01 : f32
    %108 = vector.broadcast %cst_56 : f32 to vector<8x1xf32>
    %109 = arith.divf %107, %108 : vector<8x1xf32>
    %110 = vector.broadcast %102 : vector<8x1xf32> to vector<8x32xf32>
    %111 = arith.subf %94, %110 : vector<8x32xf32>
    %cst_57 = arith.constant 9.99999974E-6 : f32
    %112 = vector.broadcast %cst_57 : f32 to vector<8x1xf32>
    %113 = arith.addf %109, %112 : vector<8x1xf32>
    %114 = math.rsqrt %113 : vector<8x1xf32>
    %115 = vector.broadcast %114 : vector<8x1xf32> to vector<8x32xf32>
    %116 = arith.mulf %111, %115 : vector<8x32xf32>
    %117 = vector.shape_cast %96 : vector<32xf32> to vector<1x32xf32>
    %118 = vector.broadcast %117 : vector<1x32xf32> to vector<8x32xf32>
    %119 = arith.mulf %116, %118 : vector<8x32xf32>
    %120 = vector.shape_cast %98 : vector<32xf32> to vector<1x32xf32>
    %121 = vector.broadcast %120 : vector<1x32xf32> to vector<8x32xf32>
    %122 = arith.addf %119, %121 : vector<8x32xf32>
    %c0_58 = arith.constant 0 : index
    %c0_59 = arith.constant 0 : index
    %c0_60 = arith.constant 0 : index
    %123 = vector.load %arg11[%c0_58, %c0_59, %c0_60] : memref<1x8x32xf32, #tpu.memory_space<vmem>>, vector<1x8x32xf32>
    %124 = vector.shape_cast %123 : vector<1x8x32xf32> to vector<8x32xf32>
    %125 = vector.shape_cast %122 : vector<8x32xf32> to vector<1x8x32xf32>
    tpu.vector_store %arg11[%c0_58, %c0_59, %c0_60], %125 {strides = array<i32>} : memref<1x8x32xf32, #tpu.memory_space<vmem>>, vector<1x8x32xf32>,
    return
  }
  func.func @transform_0(%arg0: i32) -> (i32, i32, i32) {
    %c0_i32 = arith.constant 0 : i32
    %c0_i32_0 = arith.constant 0 : i32
    %c0_i32_1 = arith.constant 0 : i32
    return %arg0, %c0_i32, %c0_i32_0 : i32, i32, i32
  }
  func.func @transform_1(%arg0: i32) -> (i32, i32) {
    %c0_i32 = arith.constant 0 : i32
    %c0_i32_0 = arith.constant 0 : i32
    %c0_i32_1 = arith.constant 0 : i32
    return %c0_i32, %c0_i32_0 : i32, i32
  }
  func.func @transform_2(%arg0: i32) -> (i32, i32) {
    %c0_i32 = arith.constant 0 : i32
    %c0_i32_0 = arith.constant 0 : i32
    %c0_i32_1 = arith.constant 0 : i32
    return %c0_i32, %c0_i32_0 : i32, i32
  }
  func.func @transform_3(%arg0: i32) -> (i32, i32) {
    %c0_i32 = arith.constant 0 : i32
    %c0_i32_0 = arith.constant 0 : i32
    %c0_i32_1 = arith.constant 0 : i32
    return %c0_i32, %c0_i32_0 : i32, i32
  }
  func.func @transform_4(%arg0: i32) -> (i32, i32) {
    %c0_i32 = arith.constant 0 : i32
    %c0_i32_0 = arith.constant 0 : i32
    %c0_i32_1 = arith.constant 0 : i32
    return %c0_i32, %c0_i32_0 : i32, i32
  }
  func.func @transform_5(%arg0: i32) -> (i32, i32) {
    %c0_i32 = arith.constant 0 : i32
    %c0_i32_0 = arith.constant 0 : i32
    %c0_i32_1 = arith.constant 0 : i32
    return %c0_i32, %c0_i32_0 : i32, i32
  }
  func.func @transform_6(%arg0: i32) -> (i32, i32) {
    %c0_i32 = arith.constant 0 : i32
    %c0_i32_0 = arith.constant 0 : i32
    %c0_i32_1 = arith.constant 0 : i32
    return %c0_i32, %c0_i32_0 : i32, i32
  }
  func.func @transform_7(%arg0: i32) -> (i32, i32) {
    %c0_i32 = arith.constant 0 : i32
    %c0_i32_0 = arith.constant 0 : i32
    %c0_i32_1 = arith.constant 0 : i32
    return %c0_i32, %c0_i32_0 : i32, i32
  }
  func.func @transform_8(%arg0: i32) -> (i32, i32) {
    %c0_i32 = arith.constant 0 : i32
    %c0_i32_0 = arith.constant 0 : i32
    %c0_i32_1 = arith.constant 0 : i32
    return %c0_i32, %c0_i32_0 : i32, i32
  }
  func.func @transform_9(%arg0: i32) -> (i32, i32) {
    %c0_i32 = arith.constant 0 : i32
    %c0_i32_0 = arith.constant 0 : i32
    %c0_i32_1 = arith.constant 0 : i32
    return %c0_i32, %c0_i32_0 : i32, i32
  }
  func.func @transform_10(%arg0: i32) -> (i32, i32, i32) {
    %c0_i32 = arith.constant 0 : i32
    %c0_i32_0 = arith.constant 0 : i32
    %c0_i32_1 = arith.constant 0 : i32
    return %arg0, %c0_i32, %c0_i32_0 : i32, i32, i32
  }
}

</mosaic_0001>

<bundles_post_ra>
// kernel: tpu_custom_call.1
= control target key start
LH: loop header
LB: loop body
LE: loop exit
PB: predicated region body
PF: predicated region fallthrough
CT: control target
= control target key end

     0   :  { %s2218_s0 = inlined_call_operand.hbm [shape: f32[2,8,32], index: 0, kind: input, shape index: {}]   ;;  %s2219_s1 = inlined_call_operand.hbm [shape: bf16[32,32], index: 1, kind: input, shape index: {}]   ;;  %s2220_s2 = inlined_call_operand.hbm [shape: bf16[32,32], index: 2, kind: input, shape index: {}]   ;;  %s2221_s3 = inlined_call_operand.hbm [shape: bf16[32,32], index: 3, kind: input, shape index: {}]   ;;  %s2222_s4 = inlined_call_operand.hbm [shape: bf16[32,32], index: 4, kind: input, shape index: {}]   ;;  %s2223_s5 = inlined_call_operand.vmem [shape: f32[1,32], index: 5, kind: input, shape index: {}]   ;;  %s2224_s6 = inlined_call_operand.vmem [shape: f32[1,32], index: 6, kind: input, shape index: {}]   ;;  %s2225_s7 = inlined_call_operand.vmem [shape: f32[1,32], index: 7, kind: input, shape index: {}]   ;;  %s2226_s8 = inlined_call_operand.vmem [shape: f32[1,32], index: 8, kind: input, shape index: {}]   ;;  %s2227_s9 = inlined_call_operand.vmem [shape: f32[1,32], index: 9, kind: input, shape index: {}]   ;;  %s2228_s10 = inlined_call_operand.hbm [shape: f32[2,8,32], index: 10, kind: output, shape index: {}]  }
   0x1   :  { %2233 = sst [smem:[#allocation16_spill]] %s2219_s1 }
   0x2   :  { %2234 = sst [smem:[#allocation17_spill]] %s2227_s9 }
   0x3   :  { %2235 = sst [smem:[#allocation18_spill]] %s2228_s10 }
   0x4   :  { %15 = vsyncpa [#allocation3], 0 }
   0x5   :  { %17 = vsyncpa [#allocation3 + $0x1], 0 }
   0x6   :  { %18 = vsyncpa [#allocation6], 0 }
   0x7   :  { %19 = vsyncpa [#allocation9], 0 }
   0x8   :  { %20 = vsyncpa [#allocation4], 0 }
   0x9   :  { %22 = vsyncpa [#allocation4 + $0x1], 0  ;;  %s1820_s13 = smov 0   ;;  %s1822_s14 = smov 0  }
   0xa   :  { %s1824_s15 = smov 0   ;;  %s1826_s16 = smov 0  }
   0xb LB: > { %s1754_s17 = smov [#allocation5]   ;;  %s1841_s19 = sadd.s32 4294967295, %s1752_s16   ;;  %s1752_s16 = sphi %s1826_s16, %s2259_s16   ;;  %s1748_s15 = sphi %s1824_s15, %s2258_s15   ;;  %s1744_s14 = sphi %s1822_s14, %s2257_s14   ;;  %s1740_s13 = sphi %s1820_s13, %s2256_s13  }
   0xc   : > { %s286_s18 = sshll.u32 %s1754_s17, 4  ;;  %p1268_p0 = scmp.ge.s32.totalorder %s1752_s16, 1  ;;  %s1846_s18 = int_to_ptr.vmem [resolvable:$true] %s286_s18 }
   0xd   : > { %p2230_p1 = scmp.eq.s32.totalorder %s1841_s19, 0  ;;  %p274_p2 = scmp.lt.s32.totalorder %s1752_s16, 3 }
   0xe   : > { %s1755_s21 = smov [#allocation8]   ;;  %s1756_s24 = smov [#allocation7]  }
   0xf   : > { %p1848_p3 = pnand %p1268_p0, %p274_p2  ;;  %s312_s22 = sshll.u32 %s1755_s21, 4  ;;  %s1861_s22 = int_to_ptr.vmem [resolvable:$true] %s312_s22 }
  0x10   : > { %s299_s25 = sshll.u32 %s1756_s24, 4  ;;  %s2238_s1 = sld [smem:[#allocation16_spill]]  ;;  %s1863_s25 = int_to_ptr.vmem [resolvable:$true] %s299_s25 }
  0x11   : > { %s2236_s20 = scalar_select %p1848_p3, 1, 0 }
  0x12   : > { %p1446_p5 = pneg %p1848_p3 }
  0x14   : > { %p1857_p6 = pnand %p1446_p5, %p2230_p1 }
  0x16   : > { %s1536_s28 = scalar_lea.hbm %s2238_s1, 256  ;;  %p1873_p8 = pneg %p1857_p6 }
  0x17   : > { %p1537_p7 = scmp.ne.s32.totalorder %s2238_s1, %s1536_s28  ;;  %p1543_p11 = scmp.lt.u32.totalorder %s1536_s28, %s2238_s1 }
  0x19   : > { %p1539_p9 = pnand %p1873_p8, %p1537_p7 }
  0x1b   : > { %p1540_p10 = pneg %p1539_p9 }
  0x1d   : > { %p1545_p12 = pnand %p1543_p11, %p1540_p10 }
  0x1f   : > { %1548 = shalt.err (!%p1545_p12)
}
  0x20   : > { %s1549_s21 = scalar_lea.vmem %s1846_s18, 256  ;;  %p1557_p5 = scmp.lt.s32.totalorder %s1846_s18, %s1846_s18 }
  0x21   : > { %p1550_p13 = scmp.ne.s32.totalorder %s1846_s18, %s1549_s21  ;;  %p1558_p4 = scmp.lt.s32.totalorder %s1549_s21, %s1549_s21 }
  0x23   : > { %p1552_p0 = pnand %p1550_p13, %p1873_p8  ;;  %p1559_p7 = por %p1558_p4, %p1557_p5 }
  0x25   : > { %p1553_p2 = pneg %p1552_p0 }
  0x27   : > { %p1560_p9 = pnand %p1559_p7, %p1553_p2 }
  0x29   : > { %1563 = shalt.err (!%p1560_p9)
}
  0x2a   : > { %s1757_s24 = smov 64   ;;  %s1758_s26 = smov 4  }
  0x2b   : > { %1449 = dma.hbm_to_vmem [thread:$0]  (!%p1857_p6), %s2238_s1, 256, %s1846_s18, [#allocation6], %s1757_s24, %s1757_s24, %s1758_s26  }
  0x2c   : > { %s1564_s12 = scalar_lea.hbm %s2221_s3, 256 }
  0x2d   : > { %p1565_p4 = scmp.ne.s32.totalorder %s2221_s3, %s1564_s12  ;;  %p1571_p12 = scmp.lt.u32.totalorder %s1564_s12, %s2221_s3 }
  0x2f   : > { %p1567_p10 = pnand %p1565_p4, %p1873_p8 }
  0x31   : > { %p1568_p11 = pneg %p1567_p10 }
  0x33   : > { %p1573_p13 = pnand %p1571_p12, %p1568_p11 }
  0x35   : > { %1576 = shalt.err (!%p1573_p13)
}
  0x36   : > { %s1577_s18 = scalar_lea.vmem %s1861_s22, 256  ;;  %p1585_p7 = scmp.lt.s32.totalorder %s1861_s22, %s1861_s22 }
  0x37   : > { %p1578_p0 = scmp.ne.s32.totalorder %s1861_s22, %s1577_s18  ;;  %p1586_p9 = scmp.lt.s32.totalorder %s1577_s18, %s1577_s18 }
  0x39   : > { %p1580_p2 = pnand %p1578_p0, %p1873_p8  ;;  %p1587_p4 = por %p1586_p9, %p1585_p7 }
  0x3b   : > { %p1581_p5 = pneg %p1580_p2 }
  0x3d   : > { %p1588_p10 = pnand %p1587_p4, %p1581_p5 }
  0x3f   : > { %1591 = shalt.err (!%p1588_p10)
}
  0x40   : > { %1455 = dma.hbm_to_vmem [thread:$0]  (!%p1857_p6), %s2221_s3, 256, %s1861_s22, [#allocation9], %s1757_s24, %s1757_s24, %s1758_s26  }
  0x41   : > { %s1592_s29 = scalar_lea.hbm %s2220_s2, 256 }
  0x42   : > { %p1593_p11 = scmp.ne.s32.totalorder %s2220_s2, %s1592_s29  ;;  %p1599_p0 = scmp.lt.u32.totalorder %s1592_s29, %s2220_s2 }
  0x44   : > { %p1595_p12 = pnand %p1593_p11, %p1873_p8 }
  0x46   : > { %p1596_p13 = pneg %p1595_p12 }
  0x48   : > { %p1601_p2 = pnand %p1599_p0, %p1596_p13 }
  0x4a   : > { %1604 = shalt.err (!%p1601_p2)
}
  0x4b   : > { %s1605_s22 = scalar_lea.vmem %s1863_s25, 256  ;;  %p1613_p4 = scmp.lt.s32.totalorder %s1863_s25, %s1863_s25 }
  0x4c   : > { %p1606_p5 = scmp.ne.s32.totalorder %s1863_s25, %s1605_s22  ;;  %p1614_p10 = scmp.lt.s32.totalorder %s1605_s22, %s1605_s22 }
  0x4e   : > { %p1608_p7 = pnand %p1606_p5, %p1873_p8  ;;  %p1615_p11 = por %p1614_p10, %p1613_p4 }
  0x50   : > { %p1609_p9 = pneg %p1608_p7 }
  0x52   : > { %p1616_p12 = pnand %p1615_p11, %p1609_p9 }
  0x54   : > { %1619 = shalt.err (!%p1616_p12)
}
  0x55   : > { %1452 = dma.hbm_to_vmem [thread:$0]  (!%p1857_p6), %s2220_s2, 256, %s1863_s25, [#allocation6], %s1757_s24, %s1757_s24, %s1758_s26  }
  0x56   : > { %s1759_s10 = smov [#allocation10]   ;;  %s1620_s30 = scalar_lea.hbm %s2222_s4, 256 }
  0x57   : > { %s325_s27 = sshll.u32 %s1759_s10, 4  ;;  %p1621_p13 = scmp.ne.s32.totalorder %s2222_s4, %s1620_s30  ;;  %s326_s27 = int_to_ptr.vmem [resolvable:$true] %s325_s27 }
  0x58   : > { %p1627_p5 = scmp.lt.u32.totalorder %s1620_s30, %s2222_s4 }
  0x59   : > { %p1623_p0 = pnand %p1621_p13, %p1873_p8 }
  0x5b   : > { %p1624_p2 = pneg %p1623_p0 }
  0x5d   : > { %p1629_p7 = pnand %p1627_p5, %p1624_p2 }
  0x5f   : > { %1632 = shalt.err (!%p1629_p7)
}
  0x60   : > { %s1633_s25 = scalar_lea.vmem %s326_s27, 256  ;;  %p1641_p11 = scmp.lt.s32.totalorder %s326_s27, %s326_s27 }
  0x61   : > { %p1634_p9 = scmp.ne.s32.totalorder %s326_s27, %s1633_s25  ;;  %p1642_p12 = scmp.lt.s32.totalorder %s1633_s25, %s1633_s25 }
  0x63   : > { %p1636_p4 = pnand %p1634_p9, %p1873_p8  ;;  %p1643_p1 = por %p1642_p12, %p1641_p11 }
  0x65   : > { %p1637_p10 = pneg %p1636_p4 }
  0x67   : > { %p1644_p3 = pnand %p1643_p1, %p1637_p10 }
  0x69   : > { %1647 = shalt.err (!%p1644_p3)
}
  0x6a   : > { %1458 = dma.hbm_to_vmem [thread:$0]  (!%p1857_p6), %s2222_s4, 256, %s326_s27, [#allocation9], %s1757_s24, %s1757_s24, %s1758_s26  }
  0x6b   : > { %s1267_s23 = sadd.s32 4294967294, %s1752_s16   ;;  %s1972_s11 = sadd.s32 1, %s1752_s16  }
  0x6c   : > { %s32_s10 = ssub.s32 %s1752_s16, %s1972_s11  ;;  %s35_s28 = sadd.s32 1, %s1748_s15 }
  0x6d   : > { %p33_p1 = scmp.eq.s32.totalorder %s32_s10, 0  ;;  %p42_p3 = scmp.ne.s32.totalorder %s1748_s15, %s1744_s14 }
  0x6e   : > { %p43_p8 = scmp.eq.s32.totalorder %s1752_s16, 0  ;;  %p48_p13 = scmp.ne.s32.totalorder %s1744_s14, %s1740_s13 }
  0x6f   : > { %s1983_s29 = scalar_select %p33_p1, %s1748_s15, %s35_s28  }
  0x70   : > { %p1985_p0 = por %p43_p8, %p42_p3  ;;  %p2241_p2 = scmp.eq.s32.totalorder %s1841_s19, 0 }
  0x71   : > { %p261_p5 = scmp.eq.s32.totalorder %s1841_s19, 1  ;;  %p267_p7 = scmp.eq.s32.totalorder %s1267_s23, 1 }
  0x72   : > { %p1991_p6 = por %p2241_p2, %p48_p13  ;;  %p1471_p9 = scmp.lt.s32.totalorder %s1752_s16, 2 }
  0x73   : > { %s354_s26 = sand.u32 1, %s1748_s15   ;;  %p1998_p4 = por %p261_p5, %p42_p3 }
  0x74   : > { %p2002_p10 = por %p267_p7, %p48_p13  ;;  %s1274_s17 = sshll.u32 %s354_s26, 3 }
  0x75   : > { %s2243_s27 = scalar_select %p1998_p4, 1, 0 }
  0x76   : > { %s2244_s12 = scalar_select %p2002_p10, 1, 0 }
  0x77   : > { %s1275_s21 = sshll.u32 %s1752_s16, 7  ;;  %s358_s9 = scalar_lea.vmem [#allocation2], %s1274_s17 }
  0x78   : > { %s2010_s18 = scalar_lea.hbm %s2218_s0, %s1275_s21  ;;  %s365_s23 = sshll.u32 %s358_s9, 4  ;;  %s2012_s23 = int_to_ptr.vmem [resolvable:$true] %s365_s23 }
  0x79   : > { %p2016_p11 = pnand %p1471_p9, %p1985_p0  ;;  %s355_s28 = scalar_lea.sflag [#allocation3], %s354_s26 }
  0x7a   : > { %s1648_s1 = scalar_lea.hbm %s2010_s18, 128  ;;  %s1653_s22 = scalar_lea.hbm %s2218_s0, 256 }
  0x7b   : > { %p1649_p12 = scmp.ne.s32.totalorder %s2010_s18, %s1648_s1  ;;  %p1650_p1 = pneg %p2016_p11 }
  0x7c   : > { %p1654_p13 = scmp.lt.u32.totalorder %s2010_s18, %s2218_s0  ;;  %p1655_p0 = scmp.lt.u32.totalorder %s1653_s22, %s1648_s1 }
  0x7d   : > { %p1651_p3 = pnand %p1650_p1, %p1649_p12  ;;  %p1657_p5 = scmp.lt.u32.totalorder %s1648_s1, %s2010_s18 }
  0x7e   : > { %p1656_p2 = por %p1655_p0, %p1654_p13 }
  0x7f   : > { %p1652_p8 = pneg %p1651_p3 }
  0x80   : > { %p1658_p7 = por %p1657_p5, %p1656_p2 }
  0x82   : > { %p1659_p9 = pnand %p1658_p7, %p1652_p8 }
  0x84   : > { %1662 = shalt.err (!%p1659_p9)
}
  0x85   : > { %s1663_s26 = scalar_lea.vmem %s2012_s23, 128  ;;  %s1760_s9 = smov [#allocation2]  }
  0x86   : > { %p1664_p12 = scmp.ne.s32.totalorder %s2012_s23, %s1663_s26  ;;  %s1668_s17 = sshll.u32 %s1760_s9, 4  ;;  %s1669_s17 = int_to_ptr.vmem [resolvable:$false] %s1668_s17 }
  0x87   : > { %s1670_s21 = scalar_lea.vmem %s1669_s17, 256  ;;  %p1671_p4 = scmp.lt.s32.totalorder %s2012_s23, %s1669_s17 }
  0x88   : > { %p1666_p3 = pnand %p1664_p12, %p1650_p1  ;;  %p1672_p13 = scmp.lt.s32.totalorder %s1670_s21, %s1663_s26 }
  0x8a   : > { %p1667_p10 = pneg %p1666_p3  ;;  %p1673_p0 = por %p1672_p13, %p1671_p4 }
  0x8c   : > { %p1674_p2 = pnand %p1673_p0, %p1667_p10 }
  0x8e   : > { %1677 = shalt.err (!%p1674_p2)
}
  0x8f   : > { %1462 = dma.hbm_to_vmem [thread:$0]  (!%p2016_p11), %s2010_s18, 128, %s2012_s23, %s355_s28  }
  0x90   : > { %p2246_p8 = scmp.ne.s32.totalorder %s2236_s20, 0 }
  0x91   : > { %s2048_s1 = sand.u32 (!%p2246_p8), 1, %s1744_s14  }
  0x92   : > { %374 = sbr.rel (%p2246_p8) target bundleno = 1919 (0x77f), region = 60  ;;  %s1277_s22 = sshll.u32 (!%p2246_p8), %s2048_s1, 3 }
  0x93   : > { %s377_s30 = scalar_lea.sflag (!%p2246_p8), [#allocation3], %s2048_s1  ;;  %s380_s25 = scalar_lea.vmem (!%p2246_p8), [#allocation2], %s1277_s22 }
  0x99   : > { %1723 = dma.done.wait (%p1991_p6), %s377_s30, 128  }
  0x9a   : > { %1725 = vsyncadd (%p1991_p6), %s377_s30, 4294967168  ;;  %p2247_p4 = scmp.eq.s32.totalorder %s1841_s19, 0 }
  0x9c   : > { %1727 = dma.done.wait (%p2247_p4), [#allocation6], 512   ;;  %p2248_p10 = pmov %p2247_p4 }
  0x9d   : > { %p2249_p11 = pmov %p2247_p4 }
  0x9e   : > { %1729 = vsyncadd (%p2248_p10), [#allocation6], 4294966784 }
  0x9f   : > { %1731 = dma.done.wait (%p2249_p11), [#allocation9], 512   ;;  %p2250_p1 = pmov %p2247_p4 }
  0xa0   : > { %v1761_v0 = vmov 0.0   ;;  %vm1762_vm0 = vmmov 0   ;;  %v1518_v1 = vld [vmem:[#allocation7] sm:$0xff]   ;;  %v1519_v2 = vld [vmem:[#allocation7 + $0x8] sm:$0xff]   ;;  %v1520_v3 = vld [vmem:[#allocation5] sm:$0xff]   ;;  %vm459_vm1 = vcmask 261120  }
  0xa1   : > { %1733 = vsyncadd (%p2250_p1), [#allocation9], 4294966784  ;;  %1350 = vmatprep.subr.bf16.mxu1 %v1761_v0  ;;  %1342 = vmatprep.subr.bf16.mxu0 %v1761_v0  ;;  %v2073_v4 = vld [vmem:[%s380_s25] sm:$0xff]  ;;  %v1521_v5 = vld [vmem:[#allocation5 + $0x8] sm:$0xff]   ;;  %s1763_s20 = smov 112   ;;  %vm631_vm2 = vcmask 130048  }
  0xa2   : > { %1354 = vmatprep.mubr.msk.bf16.mxu1 %vm1762_vm0, %v1761_v0  ;;  %1346 = vmatprep.mubr.msk.bf16.mxu0 %vm1762_vm0, %v1761_v0  ;;  %v2077_v6 = vpack.c.bf16 %v2073_v4, %v2073_v4  ;;  %v1522_v7 = vld [vmem:[#allocation8] sm:$0xff]   ;;  %v1523_v8 = vld [vmem:[#allocation8 + $0x8] sm:$0xff]   ;;  %v1287_v9 = vld [vmem:[%s2224_s6] ss:$0 sm:$0xff]  ;;  %vm703_vm3 = vcmask 1043456   ;;  %vm678_vm4 = vcmask 64512  }
  0xa3   : > { %1351 = vmatpush3.bf16.msra.mxu1 %v1518_v1  ;;  %1343 = vmatpush3.bf16.msra.mxu0 %v1520_v3  ;;  %v1283_v10 = vld [vmem:[%s2223_s5] ss:$0 sm:$0xff]  ;;  %s2251_s25 = sld [smem:[#allocation17_spill]]  ;;  %s432_s24 = scalar_lea.vmem [#allocation11], %s1277_s22 }
  0xa4   : > { %1352 = vmatprep.subr.bf16.mxu1 %v1761_v0  ;;  %1344 = vmatprep.subr.bf16.mxu0 %v1761_v0  ;;  %v1291_v24 = vld [vmem:[%s2225_s7] ss:$0 sm:$0xff]  ;;  %s1159_s18 = sshll.u32 %s432_s24, 4  ;;  %s2252_s28 = sld [smem:[#allocation18_spill]]  ;;  %s2175_s18 = int_to_ptr.vmem [resolvable:$true] %s1159_s18 }
  0xa5   : > { %800 = vrot.lane.b32.xlu0 %v1518_v1, %s1763_s20  ;;  %750 = vrot.lane.b32.xlu1 %v1520_v3, %s1763_s20  ;;  %s1146_s9 = scalar_lea.sflag [#allocation4], %s2048_s1  ;;  %s1678_s17 = scalar_lea.vmem %s2175_s18, 128 }
  0xa6   : > { %p1679_p6 = scmp.ne.s32.totalorder %s2175_s18, %s1678_s17  ;;  %p2253_p5 = scmp.ne.s32.totalorder %s2243_s27, 0 }
  0xa7   : > { %1353 = vmatpush3.bf16.msra.mxu1 %v1519_v2  ;;  %1345 = vmatpush3.bf16.msra.mxu0 %v1521_v5 }
  0xa8   : > { %1366 = vmatprep.subr.bf16.mxu1 %v1761_v0  ;;  %1358 = vmatprep.subr.bf16.mxu0 %v1761_v0  ;;  %p1680_p7 = pnand %p1679_p6, %p2253_p5 }
  0xa9   : > { %802 = vrot.lane.b32.xlu0 %v1519_v2, %s1763_s20  ;;  %752 = vrot.lane.b32.xlu1 %v1521_v5, %s1763_s20 }
  0xaa   : > { %1355 = vmatmul.mubr.msk.bf16.vlgmr.msra.gmra.mrb[0].mxu1 %vm459_vm1, %v2077_v6  ;;  %1347 = vmatmul.mubr.msk.bf16.vlgmr.msra.gmra.mrb[0].mxu0 %vm459_vm1, %v2077_v6  ;;  %p1681_p9 = pneg %p1680_p7 }
  0xab   : > { %1368 = vmatprep.mubr.msk.bf16.mxu1 %vm1762_vm0, %v1761_v0  ;;  %1362 = vmatprep.mubr.msk.bf16.mxu0 %vm1762_vm0, %v1761_v0 }
  0xac   : > { %1359 = vmatpush3.bf16.msra.mxu0 %v1522_v7 }
  0xad   : > { %1360 = vmatprep.subr.bf16.mxu0 %v1761_v0  ;;  %806 = vrot.lane.b32.xlu0 %v1287_v9, %s1763_s20 }
  0xae   : > { %756 = vrot.lane.b32.xlu1 %v1283_v10, %s1763_s20 }
  0xb0   : > { %1361 = vmatpush3.bf16.msra.mxu0 %v1523_v8 }
  0xb1   : > { %1372 = vmatprep.subr.bf16.mxu0 %v1761_v0  ;;  %849 = vrot.lane.b32.xlu0 %v1522_v7, %s1763_s20 }
  0xb2   : > { %851 = vrot.lane.b32.xlu1 %v1523_v8, %s1763_s20 }
  0xb3   : > { %1363 = vmatmul.mubr.msk.bf16.vlgmr.msra.gmra.mrb[4].mxu0 %vm459_vm1, %v2077_v6 }
  0xb4   : > { %1374 = vmatprep.mubr.msk.bf16.mxu0 %vm1762_vm0, %v1761_v0 }
  0xb5   : > { %855 = vrot.lane.b32.xlu0 %v1291_v24, %s1763_s20  ;;  %s1309_s20 = sshll.u32 %s1841_s19, 7  ;;  %s1764_s19 = smov [#allocation11]  }
  0xb6   : > { %s2173_s26 = scalar_lea.hbm %s2252_s28, %s1309_s20  ;;  %s1682_s22 = sshll.u32 %s1764_s19, 4  ;;  %s1683_s22 = int_to_ptr.vmem [resolvable:$false] %s1682_s22 }
  0xb7   : > { %s1684_s21 = scalar_lea.vmem %s1683_s22, 256  ;;  %p1685_p12 = scmp.lt.s32.totalorder %s2175_s18, %s1683_s22 }
  0xb8   : > { %p1686_p3 = scmp.lt.s32.totalorder %s1684_s21, %s1678_s17 }
  0xba   : > { %p1687_p13 = por %p1686_p3, %p1685_p12 }
  0xbc   : > { %p1688_p0 = pnand %p1687_p13, %p1681_p9 }
 0x117   : > { %v751_v32 = vpop.permute.xlu1 %750  ;;  %v801_v56 = vpop.permute.xlu0 %800 }
 0x11b   : > { %v753_v33 = vpop.permute.xlu1 %752  ;;  %v803_v59 = vpop.permute.xlu0 %802 }
 0x11f   : > { %v807_v3 = vpop.permute.xlu0 %806 }
 0x120   : > { %v757_v62 = vpop.permute.xlu1 %756 }
 0x123   : > { %v850_v5 = vpop.permute.xlu0 %849 }
 0x124   : > { %v852_v7 = vpop.permute.xlu1 %851 }
 0x17d   : > { %v561_v11 = vpop.f32.mrb[0].mxu1  ;;  %v497_v15 = vpop.f32.mrb[0].mxu0 }
 0x17e   : > { %v562_v12 = vadd.f32 %v1287_v9, %v561_v11  ;;  %v1356_v13 = vpop.f32.mrb[1].mxu1  ;;  %v1348_v18 = vpop.f32.mrb[1].mxu0  ;;  %v498_v21 = vadd.f32 %v1283_v10, %v497_v15 }
 0x17f   : > { %v564_v14 = vpop.f32.mrb[2].mxu1  ;;  %v500_v19 = vpop.f32.mrb[2].mxu0 }
 0x180   : > { %v630_v16 = vpack.c.bf16 %v562_v12, %v562_v12  ;;  %v1357_v17 = vpop.f32.mrb[3].mxu1  ;;  %v1349_v22 = vpop.f32.mrb[3].mxu0  ;;  %v503_v23 = vpack.c.bf16 %v498_v21, %v498_v21 }
 0x182   : > { %v636_v20 = vsel %vm631_vm2, %v630_v16, 0 }
 0x183   : > { %1367 = vmatpush3.bf16.xpose.msra.mxu1 %v636_v20  ;;  %v856_v20 = vpop.permute.xlu0 %855 }
 0x184   : > { %1378 = vmatprep.subr.bf16.mxu1 %v1761_v0 }
 0x186   : > { %v624_v25 = vpop.f32.mrb[4].mxu0 }
 0x187   : > { %v625_v26 = vadd.f32 %v1291_v24, %v624_v25  ;;  %v1364_v27 = vpop.f32.mrb[5].mxu0 }
 0x188   : > { %v627_v28 = vpop.f32.mrb[6].mxu0  ;;  %v1525_v27 = vld [vmem:[#allocation10 + $0x8] sm:$0xff]  }
 0x189   : > { %v699_v29 = vpack.c.bf16 %v625_v26, %v625_v26  ;;  %v1365_v30 = vpop.f32.mrb[7].mxu0 }
 0x18a   : > { %1369 = vmatmul.mubr.msk.bf16.vlgmr.msra.gmra.mrb[4].mxu1 %vm631_vm2, %v503_v23 }
 0x18b   : > { %1382 = vmatprep.mubr.msk.bf16.mxu1 %vm1762_vm0, %v1761_v0  ;;  %v705_v31 = vsel %vm703_vm3, %v699_v29, 0  ;;  %1379 = vmatpush3.bf16.msra.mxu1 %v751_v32 }
 0x18c   : > { %1373 = vmatpush3.bf16.msra.mxu0 %v705_v31  ;;  %1380 = vmatprep.subr.bf16.mxu1 %v1761_v0 }
 0x18d   : > { %1386 = vmatprep.subr.bf16.mxu0 %v1761_v0 }
 0x18f   : > { %1381 = vmatpush3.bf16.msra.mxu1 %v753_v33 }
 0x190   : > { %1394 = vmatprep.subr.bf16.mxu1 %v1761_v0 }
 0x192   : > { %1383 = vmatmul.mubr.msk.bf16.vlgmr.msra.gmra.mrb[8].mxu1 %vm459_vm1, %v2077_v6 }
 0x193   : > { %1398 = vmatprep.mubr.msk.bf16.mxu1 %vm1762_vm0, %v1761_v0  ;;  %1395 = vmatpush3.bf16.msra.mxu1 %v850_v5 }
 0x194   : > { %1396 = vmatprep.subr.bf16.mxu1 %v1761_v0 }
 0x197   : > { %1397 = vmatpush3.bf16.msra.mxu1 %v852_v7 }
 0x198   : > { %1408 = vmatprep.subr.bf16.mxu1 %v1761_v0 }
 0x19a   : > { %1399 = vmatmul.mubr.msk.bf16.vlgmr.msra.gmra.mrb[12].mxu1 %vm459_vm1, %v2077_v6 }
 0x19b   : > { %1410 = vmatprep.mubr.msk.bf16.mxu1 %vm1762_vm0, %v1761_v0 }
 0x25d   : > { %v672_v34 = vpop.f32.mrb[4].mxu1 }
 0x25e   : > { %v679_v35 = vsel %vm678_vm4, %v672_v34, -inf  ;;  %v1370_v36 = vpop.f32.mrb[5].mxu1 }
 0x25f   : > { %v680_v37 = vrot.slane %v679_v35, 4  ;;  %v675_v38 = vpop.f32.mrb[6].mxu1 }
 0x260   : > { %v1371_v39 = vpop.f32.mrb[7].mxu1 }
 0x261   : > { %v681_v40 = vmax.f32 %v679_v35, %v680_v37 }
 0x263   : > { %v682_v41 = vrot.slane %v681_v40, 2 }
 0x265   : > { %v683_v42 = vmax.f32 %v681_v40, %v682_v41  ;;  %v793_v60 = vpop.f32.mrb[8].mxu1 }
 0x266   : > { %v1384_v61 = vpop.f32.mrb[9].mxu1  ;;  %v794_v63 = vadd.f32 %v793_v60, %v757_v62 }
 0x267   : > { %v684_v43 = vrot.slane %v683_v42, 1  ;;  %v796_v1 = vpop.f32.mrb[10].mxu1 }
 0x268   : > { %v1385_v2 = vpop.f32.mrb[11].mxu1  ;;  %v799_v19 = vpack.c.bf16 %v794_v63, %v794_v63 }
 0x269   : > { %v685_v44 = vmax.f32 %v683_v42, %v684_v43 }
 0x26b   : > { %v686_v45 = vsub.f32 %v672_v34, %v685_v44 }
 0x26d   : > { %v687_v46 = vmul.f32 1.442695, %v686_v45 }
 0x26f   : > { %1526 = vpow2.f32 %v687_v46 }
 0x279   : > { %v1527_v47 = vpop.eup %1526 }
 0x27a   : > { %v689_v48 = vsel %vm678_vm4, %v1527_v47, 0.0 }
 0x27b   : > { %v690_v49 = vrot.slane %v689_v48, 4 }
 0x27d   : > { %v691_v50 = vadd.f32 %v690_v49, %v689_v48 }
 0x27f   : > { %v692_v51 = vrot.slane %v691_v50, 2 }
 0x281   : > { %v693_v52 = vadd.f32 %v692_v51, %v691_v50  ;;  %v1524_v51 = vld [vmem:[#allocation10] sm:$0xff]  }
 0x283   : > { %v694_v53 = vrot.slane %v693_v52, 1 }
 0x285   : > { %v695_v54 = vadd.f32 %v694_v53, %v693_v52 }
 0x287   : > { %1528 = vrcp.f32 %v695_v54 }
 0x291   : > { %v1529_v55 = vpop.eup %1528 }
 0x292   : > { %v697_v57 = vmul.f32 %v1529_v55, %v1527_v47 }
 0x294   : > { %v698_v58 = vpack.c.bf16 %v697_v57, %v697_v57 }
 0x296   : > { %1375 = vmatmul.mubr.msk.bf16.vlgmr.msra.gmra.mrb[8].mxu0 %vm678_vm4, %v698_v58 }
 0x297   : > { %1387 = vmatpush3.bf16.msra.mxu0 %v801_v56  ;;  %1390 = vmatprep.mubr.msk.bf16.mxu0 %vm1762_vm0, %v1761_v0 }
 0x298   : > { %1388 = vmatprep.subr.bf16.mxu0 %v1761_v0 }
 0x29b   : > { %1389 = vmatpush3.bf16.msra.mxu0 %v803_v59 }
 0x29c   : > { %1402 = vmatprep.subr.bf16.mxu0 %v1761_v0 }
 0x29e   : > { %1391 = vmatmul.mubr.msk.bf16.vlgmr.msra.gmra.mrb[12].mxu0 %vm459_vm1, %v2077_v6  ;;  %v892_v6 = vpop.f32.mrb[12].mxu1 }
 0x29f   : > { %1404 = vmatprep.mubr.msk.bf16.mxu0 %vm1762_vm0, %v1761_v0  ;;  %v1400_v21 = vpop.f32.mrb[13].mxu1  ;;  %v893_v22 = vadd.f32 %v892_v6, %v856_v20 }
 0x2a0   : > { %v895_v23 = vpop.f32.mrb[14].mxu1 }
 0x2a1   : > { %v965_v24 = vpack.c.bf16 %v893_v22, %v893_v22  ;;  %v1401_v25 = vpop.f32.mrb[15].mxu1 }
 0x2a3   : > { %v970_v26 = vsel %vm703_vm3, %v965_v24, 0 }
 0x2a4   : > { %1409 = vmatpush3.bf16.msra.mxu1 %v970_v26 }
 0x2a5   : > { %1420 = vmatprep.subr.bf16.mxu1 %v1761_v0 }
 0x369   : > { %v741_v8 = vpop.f32.mrb[8].mxu0 }
 0x36a   : > { %v1376_v9 = vpop.f32.mrb[9].mxu0  ;;  %v747_v53 = vpack.c.bf16 %v741_v8, %v741_v8 }
 0x36b   : > { %v744_v10 = vpop.f32.mrb[10].mxu0 }
 0x36c   : > { %v1377_v11 = vpop.f32.mrb[11].mxu0 }
 0x371   : > { %v843_v12 = vpop.f32.mrb[12].mxu0 }
 0x372   : > { %v844_v13 = vadd.f32 %v843_v12, %v807_v3  ;;  %v1392_v14 = vpop.f32.mrb[13].mxu0 }
 0x373   : > { %v846_v15 = vpop.f32.mrb[14].mxu0 }
 0x374   : > { %v898_v16 = vpack.c.bf16 %v844_v13, %v844_v13  ;;  %v1393_v17 = vpop.f32.mrb[15].mxu0 }
 0x376   : > { %v903_v18 = vsel %vm631_vm2, %v898_v16, 0 }
 0x377   : > { %1403 = vmatpush3.bf16.xpose.msra.mxu0 %v903_v18  ;;  %v1307_v18 = vld [vmem:[%s2251_s25] ss:$0 sm:$0xff] }
 0x378   : > { %1414 = vmatprep.subr.bf16.mxu0 %v1761_v0 }
 0x37e   : > { %1405 = vmatmul.mubr.msk.bf16.vlgmr.msra.gmra.mrb[16].mxu0 %vm631_vm2, %v799_v19 }
 0x37f   : > { %1416 = vmatprep.mubr.msk.bf16.mxu0 %vm1762_vm0, %v1761_v0  ;;  %1415 = vmatpush3.bf16.msra.mxu0 %v1525_v27 }
 0x451   : > { %v939_v28 = vpop.f32.mrb[16].mxu0 }
 0x452   : > { %v945_v29 = vsel %vm678_vm4, %v939_v28, -inf  ;;  %v1406_v30 = vpop.f32.mrb[17].mxu0 }
 0x453   : > { %v946_v31 = vrot.slane %v945_v29, 4  ;;  %v942_v32 = vpop.f32.mrb[18].mxu0 }
 0x454   : > { %v1407_v33 = vpop.f32.mrb[19].mxu0 }
 0x455   : > { %v947_v34 = vmax.f32 %v945_v29, %v946_v31 }
 0x457   : > { %v948_v35 = vrot.slane %v947_v34, 2 }
 0x459   : > { %v949_v36 = vmax.f32 %v947_v34, %v948_v35 }
 0x45b   : > { %v950_v37 = vrot.slane %v949_v36, 1 }
 0x45d   : > { %v951_v38 = vmax.f32 %v949_v36, %v950_v37 }
 0x45f   : > { %v952_v39 = vsub.f32 %v939_v28, %v951_v38 }
 0x461   : > { %v953_v40 = vmul.f32 1.442695, %v952_v39 }
 0x463   : > { %1530 = vpow2.f32 %v953_v40 }
 0x46d   : > { %v1531_v41 = vpop.eup %1530 }
 0x46e   : > { %v955_v42 = vsel %vm678_vm4, %v1531_v41, 0.0 }
 0x46f   : > { %v956_v43 = vrot.slane %v955_v42, 4 }
 0x471   : > { %v957_v44 = vadd.f32 %v956_v43, %v955_v42 }
 0x473   : > { %v958_v45 = vrot.slane %v957_v44, 2 }
 0x475   : > { %v959_v46 = vadd.f32 %v958_v45, %v957_v44 }
 0x477   : > { %v960_v47 = vrot.slane %v959_v46, 1 }
 0x479   : > { %v961_v48 = vadd.f32 %v960_v47, %v959_v46 }
 0x47b   : > { %1532 = vrcp.f32 %v961_v48 }
 0x485   : > { %v1533_v49 = vpop.eup %1532 }
 0x486   : > { %v963_v50 = vmul.f32 %v1533_v49, %v1531_v41 }
 0x488   : > { %v964_v52 = vpack.c.bf16 %v963_v50, %v963_v50 }
 0x48a   : > { %1411 = vmatmul.mubr.msk.bf16.vlgmr.msra.gmra.mrb[16].mxu1 %vm678_vm4, %v964_v52 }
 0x48b   : > { %1421 = vmatpush3.bf16.msra.mxu1 %v1524_v51  ;;  %1422 = vmatprep.mubr.msk.bf16.mxu1 %vm1762_vm0, %v1761_v0 }
 0x492   : > { %1423 = vmatmul.mubr.msk.bf16.vlgmr.msra.gmra.mrb[20].mxu1 %vm631_vm2, %v747_v53 }
 0x55d   : > { %v1006_v54 = vpop.f32.mrb[16].mxu1 }
 0x55e   : > { %v1012_v55 = vpack.c.bf16 %v1006_v54, %v1006_v54  ;;  %v1412_v56 = vpop.f32.mrb[17].mxu1 }
 0x55f   : > { %v1009_v57 = vpop.f32.mrb[18].mxu1 }
 0x560   : > { %v1413_v58 = vpop.f32.mrb[19].mxu1  ;;  %1417 = vmatmul.mubr.msk.bf16.vlgmr.msra.gmra.mrb[20].mxu0 %vm631_vm2, %v1012_v55 }
 0x565   : > { %v1107_v59 = vpop.f32.mrb[20].mxu1 }
 0x566   : > { %v1424_v60 = vpop.f32.mrb[21].mxu1 }
 0x567   : > { %v1110_v61 = vpop.f32.mrb[22].mxu1 }
 0x568   : > { %v1425_v62 = vpop.f32.mrb[23].mxu1 }
 0x633   : > { %v1058_v63 = vpop.f32.mrb[20].mxu0 }
 0x634   : > { %v1108_v1 = vadd.f32 %v1107_v59, %v1058_v63  ;;  %v1418_v2 = vpop.f32.mrb[21].mxu0 }
 0x635   : > { %v1061_v3 = vpop.f32.mrb[22].mxu0 }
 0x636   : > { %v1419_v5 = vpop.f32.mrb[23].mxu0  ;;  %v1113_v0 = vadd.f32 %v1108_v1, %v2073_v4  ;;  %v1306_v4 = vld [vmem:[%s2226_s8] ss:$0 sm:$0xff] }
 0x638   : > { %v1116_v7 = vsel %vm459_vm1, %v1113_v0, 0.0 }
 0x639   : > { %1117 = vadd.xlane.f32.xlu1 %v1116_v7 }
 0x6c6   : > { %v1118_v8 = vpop.xlane.xlu1 %1117 }
 0x6c7   : > { %v1120_v9 = vmul.f32 0.03125, %v1118_v8 }
 0x6c9   : > { %v1121_v10 = vsub.f32 %v1113_v0, %v1120_v9 }
 0x6cb   : > { %v1122_v11 = vmul.f32 %v1121_v10, %v1121_v10 }
 0x6cd   : > { %v1123_v12 = vsel %vm459_vm1, %v1122_v11, 0.0 }
 0x6ce   : > { %1124 = vadd.xlane.f32.xlu0 %v1123_v12 }
 0x75b   : > { %v1125_v13 = vpop.xlane.xlu0 %1124 }
 0x75c   : > { %v1126_v14 = vmul.f32 0.03125, %v1125_v13 }
 0x75e   : > { %v1127_v15 = vadd.f32 1e-05, %v1126_v14 }
 0x760   : > { %1534 = vrsqrt.f32 %v1127_v15 }
 0x76a   : > { %v1535_v16 = vpop.eup %1534 }
 0x76b   : > { %v1129_v17 = vmul.f32 %v1535_v16, %v1121_v10 }
 0x76d   : > { %v1136_v19 = vmul.f32 %v1306_v4, %v1129_v17 }
 0x76f   : > { %v1143_v6 = vadd.f32 %v1307_v18, %v1136_v19 }
 0x771   : > { %1144 = vst.msk [vmem:[%s432_s24] sm:$0xff] %vm459_vm1, %v1143_v6 }
 0x772   : > { %1691 = shalt.err (!%p1688_p0)
}
 0x773   : > { %s1692_s1 = scalar_lea.hbm %s2173_s26, 128  ;;  %s1696_s20 = scalar_lea.hbm %s2252_s28, 256 }
 0x774   : > { %p1693_p2 = scmp.ne.s32.totalorder %s2173_s26, %s1692_s1  ;;  %p1697_p10 = scmp.lt.u32.totalorder %s2173_s26, %s2252_s28 }
 0x775   : > { %p1698_p11 = scmp.lt.u32.totalorder %s1696_s20, %s1692_s1  ;;  %p1700_p6 = scmp.lt.u32.totalorder %s1692_s1, %s2173_s26 }
 0x776   : > { %p1694_p8 = pnand %p1693_p2, %p2253_p5 }
 0x777   : > { %p1699_p1 = por %p1698_p11, %p1697_p10 }
 0x778   : > { %p1695_p4 = pneg %p1694_p8 }
 0x779   : > { %p1701_p7 = por %p1700_p6, %p1699_p1 }
 0x77b   : > { %p1702_p9 = pnand %p1701_p7, %p1695_p4 }
 0x77d   : > { %1705 = shalt.err (!%p1702_p9)
}
 0x77e   : > { %1444 = dma.vmem_to_hbm [thread:$0]  (%p2253_p5), %s2175_s18, 128, %s2173_s26, %s1146_s9  }
 0x77f PF: > { %s1171_s10 = sand.u32 1, %s1740_s13   ;;  %p2254_p12 = scmp.ne.s32.totalorder %s2244_s12, 0 }
 0x780   : > { %p2255_p3 = scmp.ge.s32.totalorder %s1752_s16, 2  ;;  %s1172_s17 = scalar_lea.sflag [#allocation4], %s1171_s10 }
 0x782   : > { %p1464_p13 = pnand %p2255_p3, %p2254_p12 }
 0x784   : > { %1735 = dma.done.wait (!%p1464_p13), %s1172_s17, 128  }
 0x785   : > { %1737 = vsyncadd (!%p1464_p13), %s1172_s17, 4294967168  ;;  %p25_p0 = scmp.ge.s32.totalorder %s1972_s11, 4   ;;  %s2256_s13 = smov %s1744_s14 }
 0x786   : > { %s2257_s14 = smov %s1748_s15  ;;  %s2258_s15 = smov %s1983_s29 }
 0x787   : > { %s2259_s16 = smov %s1972_s11  ;;  %27 = sbr.rel (!%p25_p0) target bundleno = 11 (0xb), region = 121 }
 0x78e   :  { %1177 = vsyncpa [#allocation3], 1 }
 0x78f   :  { %1179 = vsyncpa [#allocation3 + $0x1], 1 }
 0x790   :  { %1180 = vsyncpa [#allocation6], 1 }
 0x791   :  { %1181 = vsyncpa [#allocation9], 1 }
 0x792   :  { %1182 = vsyncpa [#allocation4], 1 }
 0x793   :  { %1184 = vsyncpa [#allocation4 + $0x1], 1 }

</bundles_post_ra>
